<compile_context>
chip_gen: v7x
topology: tpu7x:2x2x1
jax: 0.10.0
libtpu: 0.0.40
codegen_flags: <defaults>
</compile_context>

<pallas_src>
import jax
import jax.numpy as jnp
from jax.experimental import pallas as pl
from jax.experimental.pallas import tpu as pltpu


def _round_up(x, m):
    return (x + m - 1) // m * m


def _fc_kernel(x_ref, w_ref, b_ref, o_ref):
    # x_ref: [tm, K] f32, w_ref: [K, tn] bf16, b_ref: [1, tn] f32, o_ref: [tm, tn] f32
    x = x_ref[...].astype(jnp.bfloat16)          # cast in-kernel (VPU, hidden under DMA)
    acc = jnp.dot(x, w_ref[...], preferred_element_type=jnp.float32)   # MXU, f32 accum
    o_ref[...] = acc + b_ref[...]                # bias add in f32


def _choose_batch_tiling(B):
    """Return (tm, num_batch_tiles). Pads B only to the 16-row granule, keeps
    tm <= 512, and prefers >= 2 batch tiles so v7x megacore has work on both TCs."""
    b16 = _round_up(B, 16)
    if b16 < 32:
        return b16, 1
    n_bt = max(2, -(-b16 // 512))            # ceil(b16/512), at least 2 tiles
    tm = _round_up(-(-b16 // n_bt), 16)      # ceil(b16/n_bt) rounded to 16 rows
    return tm, n_bt


def _linear_pallas(x2d, w_t, b2d):
    """y[B, n_pad] = x2d[B, K] @ w_t[K, n_pad] + b2d[1, n_pad]."""
    B, K = x2d.shape
    Kw, n_pad = w_t.shape
    assert K == Kw, f"flattened features {K} != in_features {Kw}"

    tm, n_bt = _choose_batch_tiling(B)
    b_pad = tm * n_bt
    tn = n_pad if n_pad <= 128 else 128      # narrow head: full-dim blocks; else 128 lanes
    n_nt = n_pad // tn

    x_p = x2d if b_pad == B else jnp.pad(x2d, ((0, b_pad - B), (0, 0)))

    cost = pl.CostEstimate(
        flops=2 * b_pad * K * n_pad,
        transcendentals=0,
        bytes_accessed=(x_p.size * 4 + w_t.size * 2 + b2d.size * 4
                        + b_pad * n_pad * 4),
    )

    out = pl.pallas_call(
        _fc_kernel,
        out_shape=jax.ShapeDtypeStruct((b_pad, n_pad), jnp.float32),
        grid=(n_nt, n_bt),                   # N-tiles outer, B-tiles inner -> W resident
        in_specs=[
            pl.BlockSpec((tm, K), lambda j, i: (i, 0)),   # x tile: varies with batch axis
            pl.BlockSpec((K, tn), lambda j, i: (0, j)),   # W tile: constant across batch axis
            pl.BlockSpec((1, tn), lambda j, i: (0, j)),   # bias tile
        ],
        out_specs=pl.BlockSpec((tm, tn), lambda j, i: (i, j)),
        compiler_params=pltpu.CompilerParams(
            dimension_semantics=("parallel", "parallel"),
        ),
        cost_estimate=cost,
    )(x_p, w_t, b2d)

    return out[:B, :]


def make_classifier_forward(weight, bias):
    """Prepare the Linear parameters once (outside the per-call path) and return
    a jitted forward.  weight: [num_classes, in_features], bias: [num_classes]."""
    N, K = weight.shape
    n_pad = N if N <= 128 else _round_up(N, 128)

    # One-time param prep: transpose to [K, n_pad] (kernel does a plain
    # [tm,K] x [K,tn] dot -> no per-grid-step transpose) and cast to bf16.
    w_t = jnp.pad(weight.T, ((0, 0), (0, n_pad - N))).astype(jnp.bfloat16)       # [K, n_pad]
    b2d = jnp.pad(bias, (0, n_pad - N)).astype(jnp.float32).reshape(1, n_pad)    # [1, n_pad]

    @jax.jit
    def forward(x):
        # TODO(synk): feature_extractor is an arbitrary injected nn.Module with no
        # defined architecture; it is treated as identity on extracted features.
        x2d = x.reshape(x.shape[0], -1)          # torch.flatten(x, start_dim=1)
        y = _linear_pallas(x2d, w_t, b2d)
        return y[:, :N]

    return forward


def _reference_bf16(x_nchw, weight, bias):
    # Same numerics as the kernel: bf16-rounded operands, f32 accumulation.
    x2d = x_nchw.reshape(x_nchw.shape[0], -1)
    xb = x2d.astype(jnp.bfloat16).astype(jnp.float32)
    wb = weight.astype(jnp.bfloat16).astype(jnp.float32)
    return xb @ wb.T + bias[None, :].astype(jnp.float32)


def _reference_f32(x_nchw, weight, bias):
    x2d = x_nchw.reshape(x_nchw.shape[0], -1)
    return x2d @ weight.T + bias[None, :]


if __name__ == "__main__":
    num_classes = 10
    in_features = 2048
    B = 2

    key = jax.random.PRNGKey(0)
    kx, kw, kb = jax.random.split(key, 3)

    # Input is the output of the (identity) feature extractor: [B, 2048, 1, 1].
    x = jax.random.normal(kx, (B, in_features, 1, 1), dtype=jnp.float32)

    # nn.Linear(2048, 10): weight [10, 2048], bias [10]
    bound = 1.0 / (in_features ** 0.5)
    weight = jax.random.uniform(kw, (num_classes, in_features),
                                dtype=jnp.float32, minval=-bound, maxval=bound)
    bias = jax.random.uniform(kb, (num_classes,),
                              dtype=jnp.float32, minval=-bound, maxval=bound)

    fwd = make_classifier_forward(weight, bias)
    out = jax.block_until_ready(fwd(x))

    assert out.shape == (B, num_classes), out.shape

    # Strict check against a reference using identical bf16 operand rounding.
    ref_bf16 = _reference_bf16(x, weight, bias)
    assert jnp.allclose(out, ref_bf16, atol=1e-3, rtol=1e-3), (
        f"max abs err vs bf16 ref = {jnp.max(jnp.abs(out - ref_bf16))}"
    )
    # Loose sanity check against the full-f32 reference (bf16-class error).
    ref_f32 = _reference_f32(x, weight, bias)
    assert jnp.allclose(out, ref_f32, atol=5e-2, rtol=5e-2), (
        f"max abs err vs f32 ref = {jnp.max(jnp.abs(out - ref_f32))}"
    )

    print("KERNEL_OK")
</pallas_src>

<mosaic_0001>
module attributes {stable_mosaic.version = 11 : i64} {
  func.func @_fc_kernel(%arg0: i32, %arg1: i32, %arg2: memref<16x2048xf32, #tpu.memory_space<vmem>>, %arg3: memref<2048x10xbf16, #tpu.memory_space<vmem>>, %arg4: memref<1x10xf32, #tpu.memory_space<vmem>>, %arg5: memref<16x10xf32, #tpu.memory_space<vmem>>) attributes {dimension_semantics = [#tpu.dimension_semantics<parallel>, #tpu.dimension_semantics<parallel>], iteration_bounds = array<i64: 1, 1>, scalar_prefetch = 0 : i64, scratch_operands = 0 : i64, tpu.core_type = #tpu.core_type<tc>, window_params = [{transform_indices = @transform_0, window_bounds = array<i64: 16, 2048>}, {transform_indices = @transform_1, window_bounds = array<i64: 2048, 10>}, {transform_indices = @transform_2, window_bounds = array<i64: 1, 10>}, {transform_indices = @transform_3, window_bounds = array<i64: 16, 10>}]} {
    %c0 = arith.constant 0 : index
    %c0_0 = arith.constant 0 : index
    %0 = vector.load %arg2[%c0, %c0_0] : memref<16x2048xf32, #tpu.memory_space<vmem>>, vector<16x2048xf32>
    %1 = arith.truncf %0 : vector<16x2048xf32> to vector<16x2048xbf16>
    %c0_1 = arith.constant 0 : index
    %c0_2 = arith.constant 0 : index
    %2 = vector.load %arg3[%c0_1, %c0_2] : memref<2048x10xbf16, #tpu.memory_space<vmem>>, vector<2048x10xbf16>
    %cst = arith.constant dense<0.000000e+00> : vector<16x10xf32>
    %3 = tpu.matmul %1, %2, %cst {dimension_numbers = #tpu.dot_dimension_numbers<[1], [0], [0], [1], [0, 0, 1, 1], [], []>} : vector<16x2048xbf16>, vector<2048x10xbf16>, vector<16x10xf32> -> vector<16x10xf32>
    %c0_3 = arith.constant 0 : index
    %c0_4 = arith.constant 0 : index
    %4 = vector.load %arg4[%c0_3, %c0_4] : memref<1x10xf32, #tpu.memory_space<vmem>>, vector<1x10xf32>
    %5 = vector.broadcast %4 : vector<1x10xf32> to vector<16x10xf32>
    %6 = arith.addf %3, %5 : vector<16x10xf32>
    %c0_5 = arith.constant 0 : index
    %c0_6 = arith.constant 0 : index
    %7 = vector.load %arg5[%c0_5, %c0_6] : memref<16x10xf32, #tpu.memory_space<vmem>>, vector<16x10xf32>
    tpu.vector_store %arg5[%c0_5, %c0_6], %6 {strides = array<i32>} : memref<16x10xf32, #tpu.memory_space<vmem>>, vector<16x10xf32>,
    return
  }
  func.func @transform_0(%arg0: i32, %arg1: i32) -> (i32, i32) {
    %c0_i32 = arith.constant 0 : i32
    %c0_i32_0 = arith.constant 0 : i32
    return %arg1, %c0_i32 : i32, i32
  }
  func.func @transform_1(%arg0: i32, %arg1: i32) -> (i32, i32) {
    %c0_i32 = arith.constant 0 : i32
    %c0_i32_0 = arith.constant 0 : i32
    return %c0_i32, %arg0 : i32, i32
  }
  func.func @transform_2(%arg0: i32, %arg1: i32) -> (i32, i32) {
    %c0_i32 = arith.constant 0 : i32
    %c0_i32_0 = arith.constant 0 : i32
    return %c0_i32, %arg0 : i32, i32
  }
  func.func @transform_3(%arg0: i32, %arg1: i32) -> (i32, i32) {
    %c0_i32 = arith.constant 0 : i32
    return %arg1, %arg0 : i32, i32
  }
}

</mosaic_0001>

<bundles_post_ra>
// kernel: forward.1
= control target key start
LH: loop header
LB: loop body
LE: loop exit
PB: predicated region body
PF: predicated region fallthrough
CT: control target
= control target key end

     0   :  { %8 = vsyncpa [#allocation3], 0  ;;  %s1904_s12 = smov [#allocation2]   ;;  %s2044_s0 = inlined_call_operand.vmem [shape: f32[16,2048], index: 0, kind: input, shape index: {}]   ;;  %s2045_s1 = inlined_call_operand.hbm [shape: bf16[2048,10], index: 1, kind: input, shape index: {}]   ;;  %s2046_s2 = inlined_call_operand.vmem [shape: f32[1,10], index: 2, kind: input, shape index: {}]   ;;  %s2047_s3 = inlined_call_operand.vmem [shape: f32[16,10], index: 3, kind: output, shape index: {}]  }
   0x1   :  { %s16_s13 = sshll.u32 %s1904_s12, 4  ;;  %s1880_s16 = scalar_lea.hbm %s2045_s1, 16384  ;;  %s17_s13 = int_to_ptr.vmem [resolvable:$true] %s16_s13 }
   0x2   :  { %p1881_p0 = scmp.ne.s32.totalorder %s2045_s1, %s1880_s16  ;;  %p1884_p1 = scmp.lt.u32.totalorder %s1880_s16, %s2045_s1 }
   0x4   :  { %p1886_p2 = pnand %p1884_p1, %p1881_p0 }
   0x6   :  { %1889 = shalt.err (!%p1886_p2)
}
   0x7   :  { %s1890_s21 = scalar_lea.vmem %s17_s13, 16384  ;;  %p1895_p4 = scmp.lt.s32.totalorder %s17_s13, %s17_s13 }
   0x8   :  { %p1891_p3 = scmp.ne.s32.totalorder %s17_s13, %s1890_s21  ;;  %p1896_p5 = scmp.lt.s32.totalorder %s1890_s21, %s1890_s21 }
   0xa   :  { %p1897_p6 = por %p1896_p5, %p1895_p4 }
   0xc   :  { %p1898_p7 = pnand %p1897_p6, %p1891_p3 }
   0xe   :  { %1901 = shalt.err (!%p1898_p7)
}
   0xf   :  { %s1905_s22 = smov 64   ;;  %s1906_s23 = smov 4  }
  0x10   :  { %22 = dma.hbm_to_vmem [thread:$0]  %s2045_s1, 16384, %s17_s13, [#allocation3], %s1905_s22, %s1905_s22, %s1906_s23  }
  0x11   :  { %1902 = dma.done.wait [#allocation3], 16384  }
  0x12   :  { %1903 = vsyncadd [#allocation3], 4294950912  ;;  %v1752_v0 = vld [vmem:[#allocation2 + $0x40] sm:$0xff]   ;;  %v1756_v4 = vld [vmem:[#allocation2 + $0x48] sm:$0xff]   ;;  %vm1436_vm0 = vcmask 80896  }
  0x13   :  { %v1753_v1 = vld [vmem:[#allocation2 + $0xc0] sm:$0xff]   ;;  %1573 = vmatprep.subr.bf16.mxu0 %v1752_v0  ;;  %v1757_v5 = vld [vmem:[#allocation2 + $0xc8] sm:$0xff]   ;;  %v1760_v8 = vld [vmem:[#allocation2 + $0x50] sm:$0xff]  }
  0x14   :  { %v1754_v2 = vld [vmem:[#allocation2] sm:$0xff]   ;;  %1595 = vmatprep.subr.bf16.mxu1 %v1753_v1  ;;  %v1758_v6 = vld [vmem:[#allocation2 + $0x8] sm:$0xff]   ;;  %v1761_v9 = vld [vmem:[#allocation2 + $0xd0] sm:$0xff]  }
  0x15   :  { %v1755_v3 = vld [vmem:[#allocation2 + $0x80] sm:$0xff]   ;;  %1574 = vmatpush3.bf16.msra.mxu0 %v1754_v2  ;;  %v1759_v7 = vld [vmem:[#allocation2 + $0x88] sm:$0xff]   ;;  %v1762_v10 = vld [vmem:[#allocation2 + $0x10] sm:$0xff]  }
  0x16   :  { %1596 = vmatpush3.bf16.msra.mxu1 %v1755_v3  ;;  %1575 = vmatprep.subr.bf16.mxu0 %v1756_v4  ;;  %v1763_v11 = vld [vmem:[#allocation2 + $0x90] sm:$0xff]   ;;  %v1764_v12 = vld [vmem:[#allocation2 + $0x58] sm:$0xff]   ;;  %v1768_v16 = vld [vmem:[#allocation2 + $0x60] sm:$0xff]  }
  0x17   :  { %1597 = vmatprep.subr.bf16.mxu1 %v1757_v5  ;;  %v1765_v13 = vld [vmem:[#allocation2 + $0xd8] sm:$0xff]   ;;  %v1769_v17 = vld [vmem:[#allocation2 + $0xe0] sm:$0xff]   ;;  %v1772_v20 = vld [vmem:[#allocation2 + $0x68] sm:$0xff]  }
  0x18   :  { %v1766_v14 = vld [vmem:[#allocation2 + $0x18] sm:$0xff]   ;;  %v1770_v18 = vld [vmem:[#allocation2 + $0x20] sm:$0xff]   ;;  %v1773_v21 = vld [vmem:[#allocation2 + $0xe8] sm:$0xff]  }
  0x19   :  { %1576 = vmatpush3.bf16.msra.mxu0 %v1758_v6  ;;  %v1767_v15 = vld [vmem:[#allocation2 + $0x98] sm:$0xff]   ;;  %v1771_v19 = vld [vmem:[#allocation2 + $0xa0] sm:$0xff]   ;;  %v1774_v22 = vld [vmem:[#allocation2 + $0x28] sm:$0xff]  }
  0x1a   :  { %1598 = vmatpush3.bf16.msra.mxu1 %v1759_v7  ;;  %1577 = vmatprep.subr.bf16.mxu0 %v1760_v8  ;;  %v1775_v23 = vld [vmem:[#allocation2 + $0xa8] sm:$0xff]   ;;  %v1776_v24 = vld [vmem:[#allocation2 + $0x70] sm:$0xff]   ;;  %v1780_v28 = vld [vmem:[#allocation2 + $0x78] sm:$0xff]  }
  0x1b   :  { %1599 = vmatprep.subr.bf16.mxu1 %v1761_v9  ;;  %v1777_v25 = vld [vmem:[#allocation2 + $0xf0] sm:$0xff]   ;;  %v1781_v29 = vld [vmem:[#allocation2 + $0xf8] sm:$0xff]   ;;  %v30_v32 = vld [vmem:[%s2044_s0 + $0x8] sm:$0xff] }
  0x1c   :  { %v1778_v26 = vld [vmem:[#allocation2 + $0x30] sm:$0xff]   ;;  %v1782_v30 = vld [vmem:[#allocation2 + $0x38] sm:$0xff]   ;;  %v46_v33 = vld [vmem:[%s2044_s0 + $0x88] sm:$0xff] }
  0x1d   :  { %1578 = vmatpush3.bf16.msra.mxu0 %v1762_v10  ;;  %v1779_v27 = vld [vmem:[#allocation2 + $0xb0] sm:$0xff]   ;;  %v1783_v31 = vld [vmem:[#allocation2 + $0xb8] sm:$0xff]   ;;  %v62_v35 = vpack.c.bf16 %v46_v33, %v30_v32  ;;  %v29_v37 = vld [vmem:[%s2044_s0] sm:$0xff] }
  0x1e   :  { %1600 = vmatpush3.bf16.msra.mxu1 %v1763_v11  ;;  %1579 = vmatprep.subr.bf16.mxu0 %v1764_v12  ;;  %v32_v34 = vld [vmem:[%s2044_s0 + $0x18] sm:$0xff]  ;;  %v45_v38 = vld [vmem:[%s2044_s0 + $0x80] sm:$0xff]  ;;  %v31_v41 = vld [vmem:[%s2044_s0 + $0x10] sm:$0xff] }
  0x1f   :  { %1601 = vmatprep.subr.bf16.mxu1 %v1765_v13  ;;  %v48_v36 = vld [vmem:[%s2044_s0 + $0x98] sm:$0xff]  ;;  %v61_v40 = vpack.c.bf16 %v45_v38, %v29_v37  ;;  %v47_v42 = vld [vmem:[%s2044_s0 + $0x90] sm:$0xff]  ;;  %1140 = vmatprep.mubr.bf16.mxu0 %v62_v35  ;;  %v1784_v44 = vld [vmem:[#allocation2 + $0x140] sm:$0xff]  }
  0x20   :  { %v64_v39 = vpack.c.bf16 %v48_v36, %v32_v34  ;;  %v63_v43 = vpack.c.bf16 %v47_v42, %v31_v41  ;;  %v1785_v45 = vld [vmem:[#allocation2 + $0x1c0] sm:$0xff]   ;;  %v1788_v48 = vld [vmem:[#allocation2 + $0x148] sm:$0xff]   ;;  %v1792_v52 = vld [vmem:[#allocation2 + $0x150] sm:$0xff]  }
  0x21   :  { %1580 = vmatpush3.bf16.msra.mxu0 %v1766_v14  ;;  %v1786_v46 = vld [vmem:[#allocation2 + $0x100] sm:$0xff]   ;;  %v1789_v49 = vld [vmem:[#allocation2 + $0x1c8] sm:$0xff]   ;;  %v1793_v53 = vld [vmem:[#allocation2 + $0x1d0] sm:$0xff]  }
  0x22   :  { %1602 = vmatpush3.bf16.msra.mxu1 %v1767_v15  ;;  %1581 = vmatprep.subr.bf16.mxu0 %v1768_v16  ;;  %v1787_v47 = vld [vmem:[#allocation2 + $0x180] sm:$0xff]   ;;  %v1790_v50 = vld [vmem:[#allocation2 + $0x108] sm:$0xff]   ;;  %v1794_v54 = vld [vmem:[#allocation2 + $0x110] sm:$0xff]  }
  0x23   :  { %1603 = vmatprep.subr.bf16.mxu1 %v1769_v17  ;;  %1181 = vmatprep.mubr.bf16.mxu1 %v64_v39  ;;  %v1791_v51 = vld [vmem:[#allocation2 + $0x188] sm:$0xff]   ;;  %v1795_v55 = vld [vmem:[#allocation2 + $0x190] sm:$0xff]   ;;  %v1796_v56 = vld [vmem:[#allocation2 + $0x158] sm:$0xff]  }
  0x24   :  { %v1797_v57 = vld [vmem:[#allocation2 + $0x1d8] sm:$0xff]   ;;  %v1800_v60 = vld [vmem:[#allocation2 + $0x160] sm:$0xff]   ;;  %v1804_v0 = vld [vmem:[#allocation2 + $0x168] sm:$0xff]  }
  0x25   :  { %1582 = vmatpush3.bf16.msra.mxu0 %v1770_v18  ;;  %v1798_v58 = vld [vmem:[#allocation2 + $0x118] sm:$0xff]   ;;  %v1801_v61 = vld [vmem:[#allocation2 + $0x1e0] sm:$0xff]   ;;  %v1805_v1 = vld [vmem:[#allocation2 + $0x1e8] sm:$0xff]  }
  0x26   :  { %1604 = vmatpush3.bf16.msra.mxu1 %v1771_v19  ;;  %1583 = vmatprep.subr.bf16.mxu0 %v1772_v20  ;;  %v1799_v59 = vld [vmem:[#allocation2 + $0x198] sm:$0xff]   ;;  %v1802_v62 = vld [vmem:[#allocation2 + $0x120] sm:$0xff]   ;;  %v1806_v2 = vld [vmem:[#allocation2 + $0x128] sm:$0xff]  }
  0x27   :  { %1605 = vmatprep.subr.bf16.mxu1 %v1773_v21  ;;  %v1803_v63 = vld [vmem:[#allocation2 + $0x1a0] sm:$0xff]   ;;  %v1807_v3 = vld [vmem:[#allocation2 + $0x1a8] sm:$0xff]   ;;  %v1808_v4 = vld [vmem:[#allocation2 + $0x170] sm:$0xff]  }
  0x28   :  { %v1809_v5 = vld [vmem:[#allocation2 + $0x1f0] sm:$0xff]   ;;  %v1812_v8 = vld [vmem:[#allocation2 + $0x178] sm:$0xff]   ;;  %v34_v12 = vld [vmem:[%s2044_s0 + $0x28] sm:$0xff] }
  0x29   :  { %1584 = vmatpush3.bf16.msra.mxu0 %v1774_v22  ;;  %v1810_v6 = vld [vmem:[#allocation2 + $0x130] sm:$0xff]   ;;  %v1813_v9 = vld [vmem:[#allocation2 + $0x1f8] sm:$0xff]   ;;  %v50_v13 = vld [vmem:[%s2044_s0 + $0xa8] sm:$0xff] }
  0x2a   :  { %1606 = vmatpush3.bf16.msra.mxu1 %v1775_v23  ;;  %1585 = vmatprep.subr.bf16.mxu0 %v1776_v24  ;;  %v1811_v7 = vld [vmem:[#allocation2 + $0x1b0] sm:$0xff]   ;;  %v1814_v10 = vld [vmem:[#allocation2 + $0x138] sm:$0xff]   ;;  %v66_v16 = vpack.c.bf16 %v50_v13, %v34_v12  ;;  %v33_v18 = vld [vmem:[%s2044_s0 + $0x20] sm:$0xff] }
  0x2b   :  { %1607 = vmatprep.subr.bf16.mxu1 %v1777_v25  ;;  %v1815_v11 = vld [vmem:[#allocation2 + $0x1b8] sm:$0xff]   ;;  %v49_v19 = vld [vmem:[%s2044_s0 + $0xa0] sm:$0xff]  ;;  %v35_v20 = vld [vmem:[%s2044_s0 + $0x30] sm:$0xff] }
  0x2c   :  { %v36_v14 = vld [vmem:[%s2044_s0 + $0x38] sm:$0xff]  ;;  %v65_v21 = vpack.c.bf16 %v49_v19, %v33_v18  ;;  %v51_v22 = vld [vmem:[%s2044_s0 + $0xb0] sm:$0xff]  ;;  %v1816_v24 = vld [vmem:[#allocation2 + $0x240] sm:$0xff]  }
  0x2d   :  { %1586 = vmatpush3.bf16.msra.mxu0 %v1778_v26  ;;  %v52_v15 = vld [vmem:[%s2044_s0 + $0xb8] sm:$0xff]  ;;  %v67_v23 = vpack.c.bf16 %v51_v22, %v35_v20  ;;  %v1817_v25 = vld [vmem:[#allocation2 + $0x2c0] sm:$0xff]   ;;  %v1824_v32 = vld [vmem:[#allocation2 + $0x250] sm:$0xff]  }
  0x2e   :  { %1608 = vmatpush3.bf16.msra.mxu1 %v1779_v27  ;;  %1587 = vmatprep.subr.bf16.mxu0 %v1780_v28  ;;  %v68_v17 = vpack.c.bf16 %v52_v15, %v36_v14  ;;  %v1818_v26 = vld [vmem:[#allocation2 + $0x200] sm:$0xff]   ;;  %v1820_v28 = vld [vmem:[#allocation2 + $0x248] sm:$0xff]   ;;  %v1825_v33 = vld [vmem:[#allocation2 + $0x2d0] sm:$0xff]  }
  0x2f   :  { %1609 = vmatprep.subr.bf16.mxu1 %v1781_v29  ;;  %v1819_v27 = vld [vmem:[#allocation2 + $0x280] sm:$0xff]   ;;  %v1821_v29 = vld [vmem:[#allocation2 + $0x2c8] sm:$0xff]   ;;  %v1826_v34 = vld [vmem:[#allocation2 + $0x210] sm:$0xff]  }
  0x30   :  { %v1827_v35 = vld [vmem:[#allocation2 + $0x290] sm:$0xff]   ;;  %v1828_v36 = vld [vmem:[#allocation2 + $0x258] sm:$0xff]   ;;  %v1833_v41 = vld [vmem:[#allocation2 + $0x2e0] sm:$0xff]  }
  0x31   :  { %1588 = vmatpush3.bf16.msra.mxu0 %v1782_v30  ;;  %v1822_v30 = vld [vmem:[#allocation2 + $0x208] sm:$0xff]   ;;  %v1829_v37 = vld [vmem:[#allocation2 + $0x2d8] sm:$0xff]   ;;  %v1834_v42 = vld [vmem:[#allocation2 + $0x220] sm:$0xff]  }
  0x32   :  { %1610 = vmatpush3.bf16.msra.mxu1 %v1783_v31  ;;  %1617 = vmatprep.subr.bf16.mxu0 %v1784_v44  ;;  %v1823_v31 = vld [vmem:[#allocation2 + $0x288] sm:$0xff]   ;;  %v1830_v38 = vld [vmem:[#allocation2 + $0x218] sm:$0xff]   ;;  %v1856_v12 = vld [vmem:[#allocation2 + $0x350] sm:$0xff]  }
  0x33   :  { %1639 = vmatprep.subr.bf16.mxu1 %v1785_v45  ;;  %v1831_v39 = vld [vmem:[#allocation2 + $0x298] sm:$0xff]   ;;  %v1836_v44 = vld [vmem:[#allocation2 + $0x268] sm:$0xff]   ;;  %v1857_v13 = vld [vmem:[#allocation2 + $0x3d0] sm:$0xff]  }
  0x34   :  { %1141 = vmatmul.mubr.bf16.vlgmr.msra.gmra.mrb[0].mxu0 %v61_v40  ;;  %v1832_v40 = vld [vmem:[#allocation2 + $0x260] sm:$0xff]   ;;  %v1837_v45 = vld [vmem:[#allocation2 + $0x2e8] sm:$0xff]   ;;  %v1858_v14 = vld [vmem:[#allocation2 + $0x310] sm:$0xff]  }
  0x35   :  { %1182 = vmatmul.mubr.bf16.vlgmr.msra.gmra.mrb[0].mxu1 %v63_v43  ;;  %1618 = vmatpush3.bf16.msra.mxu0 %v1786_v46  ;;  %v1835_v43 = vld [vmem:[#allocation2 + $0x2a0] sm:$0xff]   ;;  %v1838_v46 = vld [vmem:[#allocation2 + $0x228] sm:$0xff]   ;;  %v1859_v15 = vld [vmem:[#allocation2 + $0x390] sm:$0xff]  }
  0x36   :  { %1640 = vmatpush3.bf16.msra.mxu1 %v1787_v47  ;;  %1619 = vmatprep.subr.bf16.mxu0 %v1788_v48  ;;  %v1839_v47 = vld [vmem:[#allocation2 + $0x2a8] sm:$0xff]   ;;  %v1840_v48 = vld [vmem:[#allocation2 + $0x270] sm:$0xff]   ;;  %v1862_v18 = vld [vmem:[#allocation2 + $0x318] sm:$0xff]  }
  0x37   :  { %1641 = vmatprep.subr.bf16.mxu1 %v1789_v49  ;;  %1222 = vmatprep.mubr.bf16.mxu0 %v66_v16  ;;  %v1841_v49 = vld [vmem:[#allocation2 + $0x2f0] sm:$0xff]   ;;  %v1860_v16 = vld [vmem:[#allocation2 + $0x358] sm:$0xff]   ;;  %v1864_v20 = vld [vmem:[#allocation2 + $0x360] sm:$0xff]  }
  0x38   :  { %1263 = vmatprep.mubr.bf16.mxu1 %v68_v17  ;;  %v1861_v17 = vld [vmem:[#allocation2 + $0x3d8] sm:$0xff]   ;;  %v1866_v22 = vld [vmem:[#allocation2 + $0x320] sm:$0xff]  }
  0x39   :  { %1620 = vmatpush3.bf16.msra.mxu0 %v1790_v50  ;;  %v1842_v50 = vld [vmem:[#allocation2 + $0x230] sm:$0xff]   ;;  %v1863_v19 = vld [vmem:[#allocation2 + $0x398] sm:$0xff]  }
  0x3a   :  { %1642 = vmatpush3.bf16.msra.mxu1 %v1791_v51  ;;  %1621 = vmatprep.subr.bf16.mxu0 %v1792_v52  ;;  %v1843_v51 = vld [vmem:[#allocation2 + $0x2b0] sm:$0xff]   ;;  %v1844_v52 = vld [vmem:[#allocation2 + $0x278] sm:$0xff]  }
  0x3b   :  { %1643 = vmatprep.subr.bf16.mxu1 %v1793_v53  ;;  %v1845_v53 = vld [vmem:[#allocation2 + $0x2f8] sm:$0xff]  }
  0x3d   :  { %1622 = vmatpush3.bf16.msra.mxu0 %v1794_v54  ;;  %v1846_v54 = vld [vmem:[#allocation2 + $0x238] sm:$0xff]  }
  0x3e   :  { %1644 = vmatpush3.bf16.msra.mxu1 %v1795_v55  ;;  %1623 = vmatprep.subr.bf16.mxu0 %v1796_v56  ;;  %v1847_v55 = vld [vmem:[#allocation2 + $0x2b8] sm:$0xff]   ;;  %v38_v56 = vld [vmem:[%s2044_s0 + $0x48] sm:$0xff] }
  0x3f   :  { %1645 = vmatprep.subr.bf16.mxu1 %v1797_v57  ;;  %v54_v57 = vld [vmem:[%s2044_s0 + $0xc8] sm:$0xff] }
  0x41   :  { %1624 = vmatpush3.bf16.msra.mxu0 %v1798_v58  ;;  %v70_v58 = vpack.c.bf16 %v54_v57, %v38_v56 }
  0x42   :  { %1646 = vmatpush3.bf16.msra.mxu1 %v1799_v59  ;;  %1625 = vmatprep.subr.bf16.mxu0 %v1800_v60  ;;  %v40_v59 = vld [vmem:[%s2044_s0 + $0x58] sm:$0xff] }
  0x43   :  { %1647 = vmatprep.subr.bf16.mxu1 %v1801_v61  ;;  %v56_v60 = vld [vmem:[%s2044_s0 + $0xd8] sm:$0xff]  ;;  %v37_v61 = vld [vmem:[%s2044_s0 + $0x40] sm:$0xff] }
  0x45   :  { %1626 = vmatpush3.bf16.msra.mxu0 %v1802_v62  ;;  %v72_v62 = vpack.c.bf16 %v56_v60, %v40_v59 }
  0x46   :  { %1648 = vmatpush3.bf16.msra.mxu1 %v1803_v63  ;;  %1627 = vmatprep.subr.bf16.mxu0 %v1804_v0  ;;  %v53_v63 = vld [vmem:[%s2044_s0 + $0xc0] sm:$0xff]  ;;  %v39_v0 = vld [vmem:[%s2044_s0 + $0x50] sm:$0xff] }
  0x47   :  { %1649 = vmatprep.subr.bf16.mxu1 %v1805_v1  ;;  %v55_v1 = vld [vmem:[%s2044_s0 + $0xd0] sm:$0xff] }
  0x49   :  { %1628 = vmatpush3.bf16.msra.mxu0 %v1806_v2  ;;  %v69_v2 = vpack.c.bf16 %v53_v63, %v37_v61 }
  0x4a   :  { %1650 = vmatpush3.bf16.msra.mxu1 %v1807_v3  ;;  %1629 = vmatprep.subr.bf16.mxu0 %v1808_v4  ;;  %v71_v3 = vpack.c.bf16 %v55_v1, %v39_v0  ;;  %v1848_v4 = vld [vmem:[#allocation2 + $0x340] sm:$0xff]  }
  0x4b   :  { %1651 = vmatprep.subr.bf16.mxu1 %v1809_v5  ;;  %v1849_v5 = vld [vmem:[#allocation2 + $0x3c0] sm:$0xff]  }
  0x4d   :  { %1630 = vmatpush3.bf16.msra.mxu0 %v1810_v6  ;;  %v1850_v6 = vld [vmem:[#allocation2 + $0x300] sm:$0xff]  }
  0x4e   :  { %1652 = vmatpush3.bf16.msra.mxu1 %v1811_v7  ;;  %1631 = vmatprep.subr.bf16.mxu0 %v1812_v8  ;;  %v1851_v7 = vld [vmem:[#allocation2 + $0x380] sm:$0xff]   ;;  %v1852_v8 = vld [vmem:[#allocation2 + $0x348] sm:$0xff]  }
  0x4f   :  { %1653 = vmatprep.subr.bf16.mxu1 %v1813_v9  ;;  %v1853_v9 = vld [vmem:[#allocation2 + $0x3c8] sm:$0xff]  }
  0x51   :  { %1632 = vmatpush3.bf16.msra.mxu0 %v1814_v10  ;;  %v1854_v10 = vld [vmem:[#allocation2 + $0x308] sm:$0xff]  }
  0x52   :  { %1654 = vmatpush3.bf16.msra.mxu1 %v1815_v11  ;;  %1661 = vmatprep.subr.bf16.mxu0 %v1816_v24  ;;  %v1855_v11 = vld [vmem:[#allocation2 + $0x388] sm:$0xff]  }
  0x53   :  { %1683 = vmatprep.subr.bf16.mxu1 %v1817_v25  ;;  %v1868_v24 = vld [vmem:[#allocation2 + $0x368] sm:$0xff]  }
  0x54   :  { %1223 = vmatmul.mubr.bf16.vlgmr.msra.gmra.mrb[4].mxu0 %v65_v21  ;;  %v1865_v21 = vld [vmem:[#allocation2 + $0x3e0] sm:$0xff]   ;;  %v1869_v25 = vld [vmem:[#allocation2 + $0x3e8] sm:$0xff]  }
  0x55   :  { %1264 = vmatmul.mubr.bf16.vlgmr.msra.gmra.mrb[4].mxu1 %v67_v23  ;;  %1662 = vmatpush3.bf16.msra.mxu0 %v1818_v26  ;;  %v1867_v23 = vld [vmem:[#allocation2 + $0x3a0] sm:$0xff]   ;;  %v1870_v26 = vld [vmem:[#allocation2 + $0x328] sm:$0xff]  }
  0x56   :  { %1684 = vmatpush3.bf16.msra.mxu1 %v1819_v27  ;;  %1663 = vmatprep.subr.bf16.mxu0 %v1820_v28  ;;  %v1871_v27 = vld [vmem:[#allocation2 + $0x3a8] sm:$0xff]   ;;  %v1872_v28 = vld [vmem:[#allocation2 + $0x370] sm:$0xff]  }
  0x57   :  { %1685 = vmatprep.subr.bf16.mxu1 %v1821_v29  ;;  %1304 = vmatprep.mubr.bf16.mxu0 %v70_v58  ;;  %v1873_v29 = vld [vmem:[#allocation2 + $0x3f0] sm:$0xff]  }
  0x58   :  { %1345 = vmatprep.mubr.bf16.mxu1 %v72_v62 }
  0x59   :  { %1664 = vmatpush3.bf16.msra.mxu0 %v1822_v30  ;;  %v1874_v30 = vld [vmem:[#allocation2 + $0x330] sm:$0xff]  }
  0x5a   :  { %1686 = vmatpush3.bf16.msra.mxu1 %v1823_v31  ;;  %1665 = vmatprep.subr.bf16.mxu0 %v1824_v32  ;;  %v1875_v31 = vld [vmem:[#allocation2 + $0x3b0] sm:$0xff]   ;;  %v1876_v32 = vld [vmem:[#allocation2 + $0x378] sm:$0xff]  }
  0x5b   :  { %1687 = vmatprep.subr.bf16.mxu1 %v1825_v33  ;;  %v1877_v33 = vld [vmem:[#allocation2 + $0x3f8] sm:$0xff]  }
  0x5d   :  { %1666 = vmatpush3.bf16.msra.mxu0 %v1826_v34  ;;  %v1878_v34 = vld [vmem:[#allocation2 + $0x338] sm:$0xff]  }
  0x5e   :  { %1688 = vmatpush3.bf16.msra.mxu1 %v1827_v35  ;;  %1667 = vmatprep.subr.bf16.mxu0 %v1828_v36  ;;  %v1879_v35 = vld [vmem:[#allocation2 + $0x3b8] sm:$0xff]   ;;  %v42_v36 = vld [vmem:[%s2044_s0 + $0x68] sm:$0xff] }
  0x5f   :  { %1689 = vmatprep.subr.bf16.mxu1 %v1829_v37  ;;  %v58_v37 = vld [vmem:[%s2044_s0 + $0xe8] sm:$0xff] }
  0x61   :  { %1668 = vmatpush3.bf16.msra.mxu0 %v1830_v38  ;;  %v44_v38 = vld [vmem:[%s2044_s0 + $0x78] sm:$0xff] }
  0x62   :  { %1690 = vmatpush3.bf16.msra.mxu1 %v1831_v39  ;;  %1669 = vmatprep.subr.bf16.mxu0 %v1832_v40  ;;  %v74_v39 = vpack.c.bf16 %v58_v37, %v42_v36  ;;  %v60_v40 = vld [vmem:[%s2044_s0 + $0xf8] sm:$0xff] }
  0x63   :  { %1691 = vmatprep.subr.bf16.mxu1 %v1833_v41  ;;  %v41_v41 = vld [vmem:[%s2044_s0 + $0x60] sm:$0xff] }
  0x65   :  { %1670 = vmatpush3.bf16.msra.mxu0 %v1834_v42  ;;  %v57_v42 = vld [vmem:[%s2044_s0 + $0xe0] sm:$0xff] }
  0x66   :  { %1692 = vmatpush3.bf16.msra.mxu1 %v1835_v43  ;;  %1671 = vmatprep.subr.bf16.mxu0 %v1836_v44  ;;  %v76_v43 = vpack.c.bf16 %v60_v40, %v44_v38  ;;  %v73_v44 = vpack.c.bf16 %v57_v42, %v41_v41 }
  0x67   :  { %1693 = vmatprep.subr.bf16.mxu1 %v1837_v45  ;;  %v43_v45 = vld [vmem:[%s2044_s0 + $0x70] sm:$0xff] }
  0x69   :  { %1672 = vmatpush3.bf16.msra.mxu0 %v1838_v46  ;;  %v59_v46 = vld [vmem:[%s2044_s0 + $0xf0] sm:$0xff] }
  0x6a   :  { %1694 = vmatpush3.bf16.msra.mxu1 %v1839_v47  ;;  %1673 = vmatprep.subr.bf16.mxu0 %v1840_v48  ;;  %v75_v47 = vpack.c.bf16 %v59_v46, %v43_v45 }
  0x6b   :  { %1695 = vmatprep.subr.bf16.mxu1 %v1841_v49 }
  0x6d   :  { %1674 = vmatpush3.bf16.msra.mxu0 %v1842_v50  ;;  %v1444_v50 = vld [vmem:[%s2046_s2] ss:$0 sm:$0xff] }
  0x6e   :  { %1696 = vmatpush3.bf16.msra.mxu1 %v1843_v51  ;;  %1675 = vmatprep.subr.bf16.mxu0 %v1844_v52 }
  0x6f   :  { %1697 = vmatprep.subr.bf16.mxu1 %v1845_v53 }
  0x71   :  { %1676 = vmatpush3.bf16.msra.mxu0 %v1846_v54 }
  0x72   :  { %1698 = vmatpush3.bf16.msra.mxu1 %v1847_v55  ;;  %1705 = vmatprep.subr.bf16.mxu0 %v1848_v4 }
  0x73   :  { %1727 = vmatprep.subr.bf16.mxu1 %v1849_v5 }
  0x74   :  { %1305 = vmatmul.mubr.bf16.vlgmr.msra.gmra.mrb[8].mxu0 %v69_v2 }
  0x75   :  { %1346 = vmatmul.mubr.bf16.vlgmr.msra.gmra.mrb[8].mxu1 %v71_v3  ;;  %1706 = vmatpush3.bf16.msra.mxu0 %v1850_v6 }
  0x76   :  { %1728 = vmatpush3.bf16.msra.mxu1 %v1851_v7  ;;  %1707 = vmatprep.subr.bf16.mxu0 %v1852_v8 }
  0x77   :  { %1729 = vmatprep.subr.bf16.mxu1 %v1853_v9  ;;  %1386 = vmatprep.mubr.bf16.mxu0 %v74_v39 }
  0x78   :  { %1427 = vmatprep.mubr.bf16.mxu1 %v76_v43 }
  0x79   :  { %1708 = vmatpush3.bf16.msra.mxu0 %v1854_v10 }
  0x7a   :  { %1730 = vmatpush3.bf16.msra.mxu1 %v1855_v11  ;;  %1709 = vmatprep.subr.bf16.mxu0 %v1856_v12 }
  0x7b   :  { %1731 = vmatprep.subr.bf16.mxu1 %v1857_v13 }
  0x7d   :  { %1710 = vmatpush3.bf16.msra.mxu0 %v1858_v14 }
  0x7e   :  { %1732 = vmatpush3.bf16.msra.mxu1 %v1859_v15  ;;  %1711 = vmatprep.subr.bf16.mxu0 %v1860_v16 }
  0x7f   :  { %1733 = vmatprep.subr.bf16.mxu1 %v1861_v17 }
  0x81   :  { %1712 = vmatpush3.bf16.msra.mxu0 %v1862_v18 }
  0x82   :  { %1734 = vmatpush3.bf16.msra.mxu1 %v1863_v19  ;;  %1713 = vmatprep.subr.bf16.mxu0 %v1864_v20 }
  0x83   :  { %1735 = vmatprep.subr.bf16.mxu1 %v1865_v21 }
  0x85   :  { %1714 = vmatpush3.bf16.msra.mxu0 %v1866_v22 }
  0x86   :  { %1736 = vmatpush3.bf16.msra.mxu1 %v1867_v23  ;;  %1715 = vmatprep.subr.bf16.mxu0 %v1868_v24 }
  0x87   :  { %1737 = vmatprep.subr.bf16.mxu1 %v1869_v25 }
  0x89   :  { %1716 = vmatpush3.bf16.msra.mxu0 %v1870_v26 }
  0x8a   :  { %1738 = vmatpush3.bf16.msra.mxu1 %v1871_v27  ;;  %1717 = vmatprep.subr.bf16.mxu0 %v1872_v28 }
  0x8b   :  { %1739 = vmatprep.subr.bf16.mxu1 %v1873_v29 }
  0x8d   :  { %1718 = vmatpush3.bf16.msra.mxu0 %v1874_v30 }
  0x8e   :  { %1740 = vmatpush3.bf16.msra.mxu1 %v1875_v31  ;;  %1719 = vmatprep.subr.bf16.mxu0 %v1876_v32 }
  0x8f   :  { %1741 = vmatprep.subr.bf16.mxu1 %v1877_v33 }
  0x91   :  { %1720 = vmatpush3.bf16.msra.mxu0 %v1878_v34 }
  0x92   :  { %1742 = vmatpush3.bf16.msra.mxu1 %v1879_v35 }
  0x94   :  { %1387 = vmatmul.mubr.bf16.vlgmr.msra.gmra.mrb[12].mxu0 %v73_v44 }
  0x95   :  { %1428 = vmatmul.mubr.bf16.vlgmr.msra.gmra.mrb[12].mxu1 %v75_v47 }
 0x107   :  { %v1589_v48 = vpop.f32.mrb[0].mxu0 }
 0x108   :  { %v1611_v49 = vpop.f32.mrb[0].mxu1  ;;  %v1590_v51 = vpop.f32.mrb[1].mxu0 }
 0x109   :  { %v1591_v52 = vadd.f32 %v1590_v51, %v1589_v48  ;;  %v1612_v53 = vpop.f32.mrb[1].mxu1  ;;  %v1592_v54 = vpop.f32.mrb[2].mxu0 }
 0x10a   :  { %v1613_v55 = vadd.f32 %v1612_v53, %v1611_v49  ;;  %v1614_v56 = vpop.f32.mrb[2].mxu1  ;;  %v1593_v57 = vpop.f32.mrb[3].mxu0 }
 0x10b   :  { %v1143_v58 = vadd.f32 %v1591_v52, %v1444_v50  ;;  %v1594_v59 = vadd.f32 %v1593_v57, %v1592_v54  ;;  %v1615_v60 = vpop.f32.mrb[3].mxu1 }
 0x10c   :  { %v1616_v61 = vadd.f32 %v1615_v60, %v1614_v56 }
 0x10d   :  { %v1184_v62 = vadd.f32 %v1613_v55, %v1143_v58  ;;  %v1146_v63 = vadd.f32 %v1594_v59, %v1444_v50 }
 0x10f   :  { %v1187_v0 = vadd.f32 %v1616_v61, %v1146_v63 }
 0x127   :  { %v1633_v1 = vpop.f32.mrb[4].mxu0 }
 0x128   :  { %v1655_v2 = vpop.f32.mrb[4].mxu1  ;;  %v1634_v3 = vpop.f32.mrb[5].mxu0 }
 0x129   :  { %v1635_v4 = vadd.f32 %v1634_v3, %v1633_v1  ;;  %v1656_v5 = vpop.f32.mrb[5].mxu1  ;;  %v1636_v6 = vpop.f32.mrb[6].mxu0 }
 0x12a   :  { %v1657_v7 = vadd.f32 %v1656_v5, %v1655_v2  ;;  %v1658_v8 = vpop.f32.mrb[6].mxu1  ;;  %v1637_v9 = vpop.f32.mrb[7].mxu0 }
 0x12b   :  { %v1225_v10 = vadd.f32 %v1635_v4, %v1184_v62  ;;  %v1638_v11 = vadd.f32 %v1637_v9, %v1636_v6  ;;  %v1659_v12 = vpop.f32.mrb[7].mxu1 }
 0x12c   :  { %v1660_v13 = vadd.f32 %v1659_v12, %v1658_v8 }
 0x12d   :  { %v1266_v14 = vadd.f32 %v1657_v7, %v1225_v10  ;;  %v1228_v15 = vadd.f32 %v1638_v11, %v1187_v0 }
 0x12f   :  { %v1269_v16 = vadd.f32 %v1660_v13, %v1228_v15 }
 0x147   :  { %v1677_v17 = vpop.f32.mrb[8].mxu0 }
 0x148   :  { %v1699_v18 = vpop.f32.mrb[8].mxu1  ;;  %v1678_v19 = vpop.f32.mrb[9].mxu0 }
 0x149   :  { %v1700_v20 = vpop.f32.mrb[9].mxu1  ;;  %v1679_v21 = vadd.f32 %v1678_v19, %v1677_v17  ;;  %v1680_v23 = vpop.f32.mrb[10].mxu0 }
 0x14a   :  { %v1701_v22 = vadd.f32 %v1700_v20, %v1699_v18  ;;  %v1702_v24 = vpop.f32.mrb[10].mxu1  ;;  %v1681_v25 = vpop.f32.mrb[11].mxu0 }
 0x14b   :  { %v1703_v26 = vpop.f32.mrb[11].mxu1  ;;  %v1307_v27 = vadd.f32 %v1679_v21, %v1266_v14  ;;  %v1682_v28 = vadd.f32 %v1681_v25, %v1680_v23 }
 0x14c   :  { %v1704_v29 = vadd.f32 %v1703_v26, %v1702_v24 }
 0x14d   :  { %v1348_v30 = vadd.f32 %v1701_v22, %v1307_v27  ;;  %v1310_v31 = vadd.f32 %v1682_v28, %v1269_v16 }
 0x14f   :  { %v1351_v32 = vadd.f32 %v1704_v29, %v1310_v31 }
 0x167   :  { %v1721_v33 = vpop.f32.mrb[12].mxu0 }
 0x168   :  { %v1743_v34 = vpop.f32.mrb[12].mxu1  ;;  %v1722_v35 = vpop.f32.mrb[13].mxu0 }
 0x169   :  { %v1723_v36 = vadd.f32 %v1722_v35, %v1721_v33  ;;  %v1744_v37 = vpop.f32.mrb[13].mxu1  ;;  %v1724_v38 = vpop.f32.mrb[14].mxu0 }
 0x16a   :  { %v1745_v39 = vadd.f32 %v1744_v37, %v1743_v34  ;;  %v1746_v40 = vpop.f32.mrb[14].mxu1  ;;  %v1725_v41 = vpop.f32.mrb[15].mxu0 }
 0x16b   :  { %v1389_v42 = vadd.f32 %v1723_v36, %v1348_v30  ;;  %v1726_v43 = vadd.f32 %v1725_v41, %v1724_v38  ;;  %v1747_v44 = vpop.f32.mrb[15].mxu1 }
 0x16c   :  { %v1748_v45 = vadd.f32 %v1747_v44, %v1746_v40 }
 0x16d   :  { %v1430_v46 = vadd.f32 %v1745_v39, %v1389_v42  ;;  %v1392_v47 = vadd.f32 %v1726_v43, %v1351_v32 }
 0x16f   :  { %1437 = vst.msk [vmem:[%s2047_s3] sm:$0xff] %vm1436_vm0, %v1430_v46  ;;  %v1433_v48 = vadd.f32 %v1748_v45, %v1392_v47 }
 0x171   :  { %1438 = vst.msk [vmem:[%s2047_s3 + $0x8] sm:$0xff] %vm1436_vm0, %v1433_v48 }
 0x172   :  { %1443 = vsyncpa [#allocation3], 1 }

</bundles_post_ra>
